<compile_context>
chip_gen: v7x
topology: tpu7x:2x2x1
jax: 0.10.0
libtpu: 0.0.40
codegen_flags: <defaults>
</compile_context>

<pallas_src>
import jax
import jax.numpy as jnp
from jax.experimental import pallas as pl
from jax.experimental.pallas import tpu as pltpu


def _round_up(x, m):
    return ((x + m - 1) // m) * m


def _choose_tiles(n_dst, n_src, num_rels, in_feat, f_pad, adj_itemsize,
                  vmem_budget=24 * 1024 * 1024):
    """Pick (row tile TM, relations-per-step RB) so the double-buffered A / W
    blocks, the resident H block, the in-kernel HW temporary and the output
    accumulator stay under a conservative VMEM budget (fits v7x's 64 MiB)."""
    # Roughly TM/RB-independent VMEM users: H (dbl-buf, f32) + one HW temp (f32)
    # + slack for bias / code.
    fixed = 2 * n_src * in_feat * 4 + n_src * f_pad * 4 + 256 * 1024
    avail = max(vmem_budget - fixed, 1 << 20)

    # 1) choose TM assuming RB = 1: one A row (dbl-buf) + one out row (dbl-buf).
    per_row = 2 * n_src * adj_itemsize + 2 * f_pad * 4
    tm_cap = max(8, avail // per_row)
    if n_dst <= tm_cap:
        tm = _round_up(max(n_dst, 1), 8)          # whole problem in one row tile
    else:
        tm = min(1024, max(128, (tm_cap // 128) * 128))

    # 2) pack relations per step while everything still fits; cap the in-kernel
    #    unroll at 16 to keep code size sane.
    per_rel = 2 * (tm * n_src * adj_itemsize + in_feat * f_pad * 4)
    out_bytes = 2 * tm * f_pad * 4
    rb_cap = max(1, (avail - out_bytes) // per_rel)
    rb = int(min(num_rels, rb_cap, 16))
    # Prefer an RB that divides num_rels: avoids a padding copy of the big A.
    for cand in range(rb, 0, -1):
        if num_rels % cand == 0:
            rb = cand
            break
    return int(tm), int(rb)


# ------------------------- Pallas kernel (hot path) -------------------------
def rgcn_layer1_kernel(adj_ref, h_ref, w_ref, bias_ref, out_ref):
    # grid = (dst row tile i [parallel], relation block k [arbitrary, innermost])
    # adj_ref : (RB, TM, N_src)   streamed dtype (f32 or bf16)
    # h_ref   : (N_src, IN)       f32, resident (constant block index)
    # w_ref   : (RB, IN, Fp)      f32
    # bias_ref: (1, Fp)           f32
    # out_ref : (TM, Fp)          f32, resident across the relation axis
    k = pl.program_id(1)

    @pl.when(k == 0)
    def _():
        out_ref[...] = jnp.broadcast_to(bias_ref[...], out_ref.shape)

    acc = out_ref[...]
    for r in range(adj_ref.shape[0]):            # static unroll over RB relations
        hw = jnp.dot(h_ref[...], w_ref[r],
                     preferred_element_type=jnp.float32)       # (N_src, Fp) f32
        acc = acc + jnp.dot(adj_ref[r], hw.astype(adj_ref.dtype),
                            preferred_element_type=jnp.float32)
    out_ref[...] = acc


# ------------------------------ JAX wrapper ---------------------------------
def egl_rgcn_layer2_forward(adj, h, weight, w_comp, h_bias, activation=None,
                            adj_dtype=None):
    num_rels, n_dst, n_src = adj.shape
    num_bases, in_feat, out_feat = weight.shape

    # Basis decomposition (tiny parameter glue, stays in the wrapper).
    if num_bases < num_rels:
        w = jnp.matmul(w_comp, weight.reshape(num_bases, in_feat * out_feat))
        w = w.reshape(num_rels, in_feat, out_feat)
    else:
        w = weight
    w = w.astype(jnp.float32)
    h = h.astype(jnp.float32)

    # Stream A in the requested dtype (only cast when it actually differs; in a
    # real pipeline the adjacency builder would emit this dtype directly).
    if adj_dtype is not None and adj.dtype != jnp.dtype(adj_dtype):
        adj = adj.astype(adj_dtype)
    adj_itemsize = jnp.dtype(adj.dtype).itemsize

    # Lane-dense output feature axis.
    f_pad = _round_up(out_feat, 128)
    tm, rb = _choose_tiles(n_dst, n_src, num_rels, in_feat, f_pad, adj_itemsize)
    nd_pad = _round_up(n_dst, tm)
    r_pad = _round_up(num_rels, rb)

    # Zero padding (no-op in the common aligned case; zeros contribute nothing).
    adj_p = adj
    if (r_pad, nd_pad) != (num_rels, n_dst):
        adj_p = jnp.pad(adj, ((0, r_pad - num_rels), (0, nd_pad - n_dst), (0, 0)))
    w_p = w
    if (r_pad, f_pad) != (num_rels, out_feat):
        w_p = jnp.pad(w, ((0, r_pad - num_rels), (0, 0), (0, f_pad - out_feat)))
    bias_p = jnp.pad(h_bias.astype(jnp.float32),
                     (0, f_pad - out_feat)).reshape(1, f_pad)

    n_row_tiles = nd_pad // tm
    n_rel_steps = r_pad // rb

    flops = 2 * r_pad * n_src * f_pad * (nd_pad + n_row_tiles * in_feat)
    bytes_accessed = int(adj_p.size * adj_itemsize
                         + h.size * 4
                         + w_p.size * 4 * n_row_tiles
                         + nd_pad * f_pad * 4
                         + bias_p.size * 4)

    out_p = pl.pallas_call(
        rgcn_layer1_kernel,
        out_shape=jax.ShapeDtypeStruct((nd_pad, f_pad), jnp.float32),
        grid_spec=pltpu.PrefetchScalarGridSpec(
            num_scalar_prefetch=0,
            grid=(n_row_tiles, n_rel_steps),
            in_specs=[
                pl.BlockSpec((rb, tm, n_src), lambda i, k: (k, i, 0)),       # A block
                pl.BlockSpec((n_src, in_feat), lambda i, k: (0, 0)),         # H (resident)
                pl.BlockSpec((rb, in_feat, f_pad), lambda i, k: (k, 0, 0)),  # W block
                pl.BlockSpec((1, f_pad), lambda i, k: (0, 0)),               # bias
            ],
            out_specs=pl.BlockSpec((tm, f_pad), lambda i, k: (i, 0)),        # resident acc
        ),
        compiler_params=pltpu.CompilerParams(
            dimension_semantics=("parallel", "arbitrary"),
            vmem_limit_bytes=48 * 1024 * 1024,
        ),
        cost_estimate=pl.CostEstimate(flops=int(flops), transcendentals=0,
                                      bytes_accessed=bytes_accessed),
    )(adj_p, h, w_p, bias_p)

    out = out_p[:n_dst, :out_feat]
    # TODO(synk): activation (e.g. softmax in train.py) and dropout are configurable
    # in the original module; activation is applied outside the kernel when
    # provided and dropout is identity at inference / p=0.0.
    if activation is not None:
        out = activation(out)
    return out


# ---------------------------- reference (plain JAX) --------------------------
def egl_rgcn_layer2_ref(src, dst, etype, norm, h, weight, w_comp, h_bias,
                        num_rels, num_nodes, activation=None):
    """Edge-based reference matching the module's math exactly (f32)."""
    num_bases, in_feat, out_feat = weight.shape
    if num_bases < num_rels:
        w = jnp.matmul(w_comp, weight.reshape(num_bases, in_feat * out_feat))
        w = w.reshape(num_rels, in_feat, out_feat)
    else:
        w = weight
    msg = jnp.einsum("ei,eio->eo", h[src], w[etype],
                     precision=jax.lax.Precision.HIGHEST) * norm  # (E, out)
    out = jnp.zeros((num_nodes, out_feat), h.dtype).at[dst].add(msg)
    out = out + h_bias
    if activation is not None:
        out = activation(out)
    return out


if __name__ == "__main__":
    key = jax.random.PRNGKey(0)

    # small shapes consistent with the module
    num_nodes, hidden_dim, out_dim = 64, 32, 16
    num_rels, num_bases, num_edges = 8, 4, 256

    k_src, k_dst, k_et, k_nrm, k_h, k_w, k_wc = jax.random.split(key, 7)

    # synthetic graph
    src = jax.random.randint(k_src, (num_edges,), 0, num_nodes)
    dst = jax.random.randint(k_dst, (num_edges,), 0, num_nodes)
    etype = jax.random.randint(k_et, (num_edges,), 0, num_rels)
    edge_norm = jax.random.uniform(k_nrm, (num_edges, 1), jnp.float32, 0.1, 1.0)

    # node features from a previous layer
    h = jax.random.normal(k_h, (num_nodes, hidden_dim), jnp.float32)

    # deterministic parameter init (xavier-uniform-like with relu gain)
    gain = jnp.sqrt(2.0)
    lim_w = gain * jnp.sqrt(6.0 / (hidden_dim + out_dim))
    weight = jax.random.uniform(k_w, (num_bases, hidden_dim, out_dim),
                                jnp.float32, -lim_w, lim_w)
    lim_c = gain * jnp.sqrt(6.0 / (num_rels + num_bases))
    w_comp = jax.random.uniform(k_wc, (num_rels, num_bases),
                                jnp.float32, -lim_c, lim_c)
    h_bias = jnp.zeros((out_dim,), jnp.float32)

    # dense typed adjacency A[r, dst, src] += norm  (graph glue, plain JAX)
    adj = jnp.zeros((num_rels, num_nodes, num_nodes), jnp.float32)
    adj = adj.at[etype, dst, src].add(edge_norm[:, 0])

    ref = egl_rgcn_layer2_ref(src, dst, etype, edge_norm, h, weight, w_comp,
                              h_bias, num_rels, num_nodes, activation=None)

    # --- f32 run: exact-semantics check against the edge-based reference ---
    out_f32 = egl_rgcn_layer2_forward(adj, h, weight, w_comp, h_bias,
                                      activation=None, adj_dtype=None)
    out_f32 = jax.block_until_ready(out_f32)
    assert jnp.allclose(out_f32, ref, atol=1e-3, rtol=1e-3), \
        "f32 kernel mismatch vs JAX reference"

    # --- bf16-streaming run (halves the dominant A HBM stream when the adjacency
    #     is produced in bf16 upstream); checked loosely against the f32 ref ---
    out_bf16 = egl_rgcn_layer2_forward(adj, h, weight, w_comp, h_bias,
                                       activation=None, adj_dtype=jnp.bfloat16)
    out_bf16 = jax.block_until_ready(out_bf16)
    assert jnp.allclose(out_bf16, ref, atol=1e-1, rtol=5e-2), \
        "bf16-streaming kernel mismatch vs JAX reference"

    print("KERNEL_OK")
</pallas_src>

<mosaic_0001>
module attributes {stable_mosaic.version = 11 : i64} {
  func.func @rgcn_layer1_kernel(%arg0: i32, %arg1: i32, %arg2: memref<8x64x64xf32, #tpu.memory_space<vmem>>, %arg3: memref<64x32xf32, #tpu.memory_space<vmem>>, %arg4: memref<8x32x128xf32, #tpu.memory_space<vmem>>, %arg5: memref<1x128xf32, #tpu.memory_space<vmem>>, %arg6: memref<64x128xf32, #tpu.memory_space<vmem>>) attributes {dimension_semantics = [#tpu.dimension_semantics<parallel>, #tpu.dimension_semantics<arbitrary>], iteration_bounds = array<i64: 1, 1>, scalar_prefetch = 0 : i64, scratch_operands = 0 : i64, tpu.core_type = #tpu.core_type<tc>, window_params = [{transform_indices = @transform_0, window_bounds = array<i64: 8, 64, 64>}, {pipeline_mode = #tpu.pipeline_mode<synchronous>, transform_indices = @transform_1, window_bounds = array<i64: 64, 32>}, {transform_indices = @transform_2, window_bounds = array<i64: 8, 32, 128>}, {pipeline_mode = #tpu.pipeline_mode<synchronous>, transform_indices = @transform_3, window_bounds = array<i64: 1, 128>}, {transform_indices = @transform_4, window_bounds = array<i64: 64, 128>}]} {
    %c0_i32 = arith.constant 0 : i32
    %0 = arith.cmpi eq, %arg1, %c0_i32 : i32
    %1 = arith.extui %0 : i1 to i32
    %c0_i32_0 = arith.constant 0 : i32
    %2 = arith.cmpi ne, %1, %c0_i32_0 : i32
    scf.if %2 {
      %c0_76 = arith.constant 0 : index
      %c0_77 = arith.constant 0 : index
      %69 = vector.load %arg5[%c0_76, %c0_77] : memref<1x128xf32, #tpu.memory_space<vmem>>, vector<1x128xf32>
      %70 = vector.shape_cast %69 : vector<1x128xf32> to vector<1x128xf32>
      %71 = vector.broadcast %70 : vector<1x128xf32> to vector<64x128xf32>
      %c0_78 = arith.constant 0 : index
      %c0_79 = arith.constant 0 : index
      %72 = vector.load %arg6[%c0_78, %c0_79] : memref<64x128xf32, #tpu.memory_space<vmem>>, vector<64x128xf32>
      tpu.vector_store %arg6[%c0_78, %c0_79], %71 {strides = array<i32>} : memref<64x128xf32, #tpu.memory_space<vmem>>, vector<64x128xf32>,
    } else {
    }
    %c0 = arith.constant 0 : index
    %c0_1 = arith.constant 0 : index
    %3 = vector.load %arg6[%c0, %c0_1] : memref<64x128xf32, #tpu.memory_space<vmem>>, vector<64x128xf32>
    %c0_2 = arith.constant 0 : index
    %c0_3 = arith.constant 0 : index
    %4 = vector.load %arg3[%c0_2, %c0_3] : memref<64x32xf32, #tpu.memory_space<vmem>>, vector<64x32xf32>
    %c0_4 = arith.constant 0 : index
    %c0_5 = arith.constant 0 : index
    %c0_6 = arith.constant 0 : index
    %5 = vector.load %arg4[%c0_4, %c0_5, %c0_6] : memref<8x32x128xf32, #tpu.memory_space<vmem>>, vector<1x32x128xf32>
    %6 = vector.shape_cast %5 : vector<1x32x128xf32> to vector<32x128xf32>
    %cst = arith.constant dense<0.000000e+00> : vector<64x128xf32>
    %7 = tpu.matmul %4, %6, %cst {dimension_numbers = #tpu.dot_dimension_numbers<[1], [0], [0], [1], [0, 0, 1, 1], [], []>} : vector<64x32xf32>, vector<32x128xf32>, vector<64x128xf32> -> vector<64x128xf32>
    %c0_7 = arith.constant 0 : index
    %c0_8 = arith.constant 0 : index
    %c0_9 = arith.constant 0 : index
    %8 = vector.load %arg2[%c0_7, %c0_8, %c0_9] : memref<8x64x64xf32, #tpu.memory_space<vmem>>, vector<1x64x64xf32>
    %9 = vector.shape_cast %8 : vector<1x64x64xf32> to vector<64x64xf32>
    %cst_10 = arith.constant dense<0.000000e+00> : vector<64x128xf32>
    %10 = tpu.matmul %9, %7, %cst_10 {dimension_numbers = #tpu.dot_dimension_numbers<[1], [0], [0], [1], [0, 0, 1, 1], [], []>} : vector<64x64xf32>, vector<64x128xf32>, vector<64x128xf32> -> vector<64x128xf32>
    %11 = arith.addf %3, %10 : vector<64x128xf32>
    %c0_11 = arith.constant 0 : index
    %c0_12 = arith.constant 0 : index
    %12 = vector.load %arg3[%c0_11, %c0_12] : memref<64x32xf32, #tpu.memory_space<vmem>>, vector<64x32xf32>
    %c1 = arith.constant 1 : index
    %c0_13 = arith.constant 0 : index
    %c0_14 = arith.constant 0 : index
    %13 = vector.load %arg4[%c1, %c0_13, %c0_14] : memref<8x32x128xf32, #tpu.memory_space<vmem>>, vector<1x32x128xf32>
    %14 = vector.shape_cast %13 : vector<1x32x128xf32> to vector<32x128xf32>
    %cst_15 = arith.constant dense<0.000000e+00> : vector<64x128xf32>
    %15 = tpu.matmul %12, %14, %cst_15 {dimension_numbers = #tpu.dot_dimension_numbers<[1], [0], [0], [1], [0, 0, 1, 1], [], []>} : vector<64x32xf32>, vector<32x128xf32>, vector<64x128xf32> -> vector<64x128xf32>
    %c1_16 = arith.constant 1 : index
    %c0_17 = arith.constant 0 : index
    %c0_18 = arith.constant 0 : index
    %16 = vector.load %arg2[%c1_16, %c0_17, %c0_18] : memref<8x64x64xf32, #tpu.memory_space<vmem>>, vector<1x64x64xf32>
    %17 = vector.shape_cast %16 : vector<1x64x64xf32> to vector<64x64xf32>
    %cst_19 = arith.constant dense<0.000000e+00> : vector<64x128xf32>
    %18 = tpu.matmul %17, %15, %cst_19 {dimension_numbers = #tpu.dot_dimension_numbers<[1], [0], [0], [1], [0, 0, 1, 1], [], []>} : vector<64x64xf32>, vector<64x128xf32>, vector<64x128xf32> -> vector<64x128xf32>
    %19 = arith.addf %11, %18 : vector<64x128xf32>
    %c0_20 = arith.constant 0 : index
    %c0_21 = arith.constant 0 : index
    %20 = vector.load %arg3[%c0_20, %c0_21] : memref<64x32xf32, #tpu.memory_space<vmem>>, vector<64x32xf32>
    %c2 = arith.constant 2 : index
    %c0_22 = arith.constant 0 : index
    %c0_23 = arith.constant 0 : index
    %21 = vector.load %arg4[%c2, %c0_22, %c0_23] : memref<8x32x128xf32, #tpu.memory_space<vmem>>, vector<1x32x128xf32>
    %22 = vector.shape_cast %21 : vector<1x32x128xf32> to vector<32x128xf32>
    %cst_24 = arith.constant dense<0.000000e+00> : vector<64x128xf32>
    %23 = tpu.matmul %20, %22, %cst_24 {dimension_numbers = #tpu.dot_dimension_numbers<[1], [0], [0], [1], [0, 0, 1, 1], [], []>} : vector<64x32xf32>, vector<32x128xf32>, vector<64x128xf32> -> vector<64x128xf32>
    %c2_25 = arith.constant 2 : index
    %c0_26 = arith.constant 0 : index
    %c0_27 = arith.constant 0 : index
    %24 = vector.load %arg2[%c2_25, %c0_26, %c0_27] : memref<8x64x64xf32, #tpu.memory_space<vmem>>, vector<1x64x64xf32>
    %25 = vector.shape_cast %24 : vector<1x64x64xf32> to vector<64x64xf32>
    %cst_28 = arith.constant dense<0.000000e+00> : vector<64x128xf32>
    %26 = tpu.matmul %25, %23, %cst_28 {dimension_numbers = #tpu.dot_dimension_numbers<[1], [0], [0], [1], [0, 0, 1, 1], [], []>} : vector<64x64xf32>, vector<64x128xf32>, vector<64x128xf32> -> vector<64x128xf32>
    %27 = arith.addf %19, %26 : vector<64x128xf32>
    %c0_29 = arith.constant 0 : index
    %c0_30 = arith.constant 0 : index
    %28 = vector.load %arg3[%c0_29, %c0_30] : memref<64x32xf32, #tpu.memory_space<vmem>>, vector<64x32xf32>
    %c3 = arith.constant 3 : index
    %c0_31 = arith.constant 0 : index
    %c0_32 = arith.constant 0 : index
    %29 = vector.load %arg4[%c3, %c0_31, %c0_32] : memref<8x32x128xf32, #tpu.memory_space<vmem>>, vector<1x32x128xf32>
    %30 = vector.shape_cast %29 : vector<1x32x128xf32> to vector<32x128xf32>
    %cst_33 = arith.constant dense<0.000000e+00> : vector<64x128xf32>
    %31 = tpu.matmul %28, %30, %cst_33 {dimension_numbers = #tpu.dot_dimension_numbers<[1], [0], [0], [1], [0, 0, 1, 1], [], []>} : vector<64x32xf32>, vector<32x128xf32>, vector<64x128xf32> -> vector<64x128xf32>
    %c3_34 = arith.constant 3 : index
    %c0_35 = arith.constant 0 : index
    %c0_36 = arith.constant 0 : index
    %32 = vector.load %arg2[%c3_34, %c0_35, %c0_36] : memref<8x64x64xf32, #tpu.memory_space<vmem>>, vector<1x64x64xf32>
    %33 = vector.shape_cast %32 : vector<1x64x64xf32> to vector<64x64xf32>
    %cst_37 = arith.constant dense<0.000000e+00> : vector<64x128xf32>
    %34 = tpu.matmul %33, %31, %cst_37 {dimension_numbers = #tpu.dot_dimension_numbers<[1], [0], [0], [1], [0, 0, 1, 1], [], []>} : vector<64x64xf32>, vector<64x128xf32>, vector<64x128xf32> -> vector<64x128xf32>
    %35 = arith.addf %27, %34 : vector<64x128xf32>
    %c0_38 = arith.constant 0 : index
    %c0_39 = arith.constant 0 : index
    %36 = vector.load %arg3[%c0_38, %c0_39] : memref<64x32xf32, #tpu.memory_space<vmem>>, vector<64x32xf32>
    %c4 = arith.constant 4 : index
    %c0_40 = arith.constant 0 : index
    %c0_41 = arith.constant 0 : index
    %37 = vector.load %arg4[%c4, %c0_40, %c0_41] : memref<8x32x128xf32, #tpu.memory_space<vmem>>, vector<1x32x128xf32>
    %38 = vector.shape_cast %37 : vector<1x32x128xf32> to vector<32x128xf32>
    %cst_42 = arith.constant dense<0.000000e+00> : vector<64x128xf32>
    %39 = tpu.matmul %36, %38, %cst_42 {dimension_numbers = #tpu.dot_dimension_numbers<[1], [0], [0], [1], [0, 0, 1, 1], [], []>} : vector<64x32xf32>, vector<32x128xf32>, vector<64x128xf32> -> vector<64x128xf32>
    %c4_43 = arith.constant 4 : index
    %c0_44 = arith.constant 0 : index
    %c0_45 = arith.constant 0 : index
    %40 = vector.load %arg2[%c4_43, %c0_44, %c0_45] : memref<8x64x64xf32, #tpu.memory_space<vmem>>, vector<1x64x64xf32>
    %41 = vector.shape_cast %40 : vector<1x64x64xf32> to vector<64x64xf32>
    %cst_46 = arith.constant dense<0.000000e+00> : vector<64x128xf32>
    %42 = tpu.matmul %41, %39, %cst_46 {dimension_numbers = #tpu.dot_dimension_numbers<[1], [0], [0], [1], [0, 0, 1, 1], [], []>} : vector<64x64xf32>, vector<64x128xf32>, vector<64x128xf32> -> vector<64x128xf32>
    %43 = arith.addf %35, %42 : vector<64x128xf32>
    %c0_47 = arith.constant 0 : index
    %c0_48 = arith.constant 0 : index
    %44 = vector.load %arg3[%c0_47, %c0_48] : memref<64x32xf32, #tpu.memory_space<vmem>>, vector<64x32xf32>
    %c5 = arith.constant 5 : index
    %c0_49 = arith.constant 0 : index
    %c0_50 = arith.constant 0 : index
    %45 = vector.load %arg4[%c5, %c0_49, %c0_50] : memref<8x32x128xf32, #tpu.memory_space<vmem>>, vector<1x32x128xf32>
    %46 = vector.shape_cast %45 : vector<1x32x128xf32> to vector<32x128xf32>
    %cst_51 = arith.constant dense<0.000000e+00> : vector<64x128xf32>
    %47 = tpu.matmul %44, %46, %cst_51 {dimension_numbers = #tpu.dot_dimension_numbers<[1], [0], [0], [1], [0, 0, 1, 1], [], []>} : vector<64x32xf32>, vector<32x128xf32>, vector<64x128xf32> -> vector<64x128xf32>
    %c5_52 = arith.constant 5 : index
    %c0_53 = arith.constant 0 : index
    %c0_54 = arith.constant 0 : index
    %48 = vector.load %arg2[%c5_52, %c0_53, %c0_54] : memref<8x64x64xf32, #tpu.memory_space<vmem>>, vector<1x64x64xf32>
    %49 = vector.shape_cast %48 : vector<1x64x64xf32> to vector<64x64xf32>
    %cst_55 = arith.constant dense<0.000000e+00> : vector<64x128xf32>
    %50 = tpu.matmul %49, %47, %cst_55 {dimension_numbers = #tpu.dot_dimension_numbers<[1], [0], [0], [1], [0, 0, 1, 1], [], []>} : vector<64x64xf32>, vector<64x128xf32>, vector<64x128xf32> -> vector<64x128xf32>
    %51 = arith.addf %43, %50 : vector<64x128xf32>
    %c0_56 = arith.constant 0 : index
    %c0_57 = arith.constant 0 : index
    %52 = vector.load %arg3[%c0_56, %c0_57] : memref<64x32xf32, #tpu.memory_space<vmem>>, vector<64x32xf32>
    %c6 = arith.constant 6 : index
    %c0_58 = arith.constant 0 : index
    %c0_59 = arith.constant 0 : index
    %53 = vector.load %arg4[%c6, %c0_58, %c0_59] : memref<8x32x128xf32, #tpu.memory_space<vmem>>, vector<1x32x128xf32>
    %54 = vector.shape_cast %53 : vector<1x32x128xf32> to vector<32x128xf32>
    %cst_60 = arith.constant dense<0.000000e+00> : vector<64x128xf32>
    %55 = tpu.matmul %52, %54, %cst_60 {dimension_numbers = #tpu.dot_dimension_numbers<[1], [0], [0], [1], [0, 0, 1, 1], [], []>} : vector<64x32xf32>, vector<32x128xf32>, vector<64x128xf32> -> vector<64x128xf32>
    %c6_61 = arith.constant 6 : index
    %c0_62 = arith.constant 0 : index
    %c0_63 = arith.constant 0 : index
    %56 = vector.load %arg2[%c6_61, %c0_62, %c0_63] : memref<8x64x64xf32, #tpu.memory_space<vmem>>, vector<1x64x64xf32>
    %57 = vector.shape_cast %56 : vector<1x64x64xf32> to vector<64x64xf32>
    %cst_64 = arith.constant dense<0.000000e+00> : vector<64x128xf32>
    %58 = tpu.matmul %57, %55, %cst_64 {dimension_numbers = #tpu.dot_dimension_numbers<[1], [0], [0], [1], [0, 0, 1, 1], [], []>} : vector<64x64xf32>, vector<64x128xf32>, vector<64x128xf32> -> vector<64x128xf32>
    %59 = arith.addf %51, %58 : vector<64x128xf32>
    %c0_65 = arith.constant 0 : index
    %c0_66 = arith.constant 0 : index
    %60 = vector.load %arg3[%c0_65, %c0_66] : memref<64x32xf32, #tpu.memory_space<vmem>>, vector<64x32xf32>
    %c7 = arith.constant 7 : index
    %c0_67 = arith.constant 0 : index
    %c0_68 = arith.constant 0 : index
    %61 = vector.load %arg4[%c7, %c0_67, %c0_68] : memref<8x32x128xf32, #tpu.memory_space<vmem>>, vector<1x32x128xf32>
    %62 = vector.shape_cast %61 : vector<1x32x128xf32> to vector<32x128xf32>
    %cst_69 = arith.constant dense<0.000000e+00> : vector<64x128xf32>
    %63 = tpu.matmul %60, %62, %cst_69 {dimension_numbers = #tpu.dot_dimension_numbers<[1], [0], [0], [1], [0, 0, 1, 1], [], []>} : vector<64x32xf32>, vector<32x128xf32>, vector<64x128xf32> -> vector<64x128xf32>
    %c7_70 = arith.constant 7 : index
    %c0_71 = arith.constant 0 : index
    %c0_72 = arith.constant 0 : index
    %64 = vector.load %arg2[%c7_70, %c0_71, %c0_72] : memref<8x64x64xf32, #tpu.memory_space<vmem>>, vector<1x64x64xf32>
    %65 = vector.shape_cast %64 : vector<1x64x64xf32> to vector<64x64xf32>
    %cst_73 = arith.constant dense<0.000000e+00> : vector<64x128xf32>
    %66 = tpu.matmul %65, %63, %cst_73 {dimension_numbers = #tpu.dot_dimension_numbers<[1], [0], [0], [1], [0, 0, 1, 1], [], []>} : vector<64x64xf32>, vector<64x128xf32>, vector<64x128xf32> -> vector<64x128xf32>
    %67 = arith.addf %59, %66 : vector<64x128xf32>
    %c0_74 = arith.constant 0 : index
    %c0_75 = arith.constant 0 : index
    %68 = vector.load %arg6[%c0_74, %c0_75] : memref<64x128xf32, #tpu.memory_space<vmem>>, vector<64x128xf32>
    tpu.vector_store %arg6[%c0_74, %c0_75], %67 {strides = array<i32>} : memref<64x128xf32, #tpu.memory_space<vmem>>, vector<64x128xf32>,
    return
  }
  func.func @transform_0(%arg0: i32, %arg1: i32) -> (i32, i32, i32) {
    %c0_i32 = arith.constant 0 : i32
    %c0_i32_0 = arith.constant 0 : i32
    return %arg1, %arg0, %c0_i32 : i32, i32, i32
  }
  func.func @transform_1(%arg0: i32, %arg1: i32) -> (i32, i32) {
    %c0_i32 = arith.constant 0 : i32
    %c0_i32_0 = arith.constant 0 : i32
    %c0_i32_1 = arith.constant 0 : i32
    return %c0_i32, %c0_i32_0 : i32, i32
  }
  func.func @transform_2(%arg0: i32, %arg1: i32) -> (i32, i32, i32) {
    %c0_i32 = arith.constant 0 : i32
    %c0_i32_0 = arith.constant 0 : i32
    %c0_i32_1 = arith.constant 0 : i32
    return %arg1, %c0_i32, %c0_i32_0 : i32, i32, i32
  }
  func.func @transform_3(%arg0: i32, %arg1: i32) -> (i32, i32) {
    %c0_i32 = arith.constant 0 : i32
    %c0_i32_0 = arith.constant 0 : i32
    %c0_i32_1 = arith.constant 0 : i32
    return %c0_i32, %c0_i32_0 : i32, i32
  }
  func.func @transform_4(%arg0: i32, %arg1: i32) -> (i32, i32) {
    %c0_i32 = arith.constant 0 : i32
    %c0_i32_0 = arith.constant 0 : i32
    return %arg0, %c0_i32 : i32, i32
  }
}

</mosaic_0001>

<bundles_post_ra>
// kernel: tpu_custom_call.1
= control target key start
LH: loop header
LB: loop body
LE: loop exit
PB: predicated region body
PF: predicated region fallthrough
CT: control target
= control target key end

     0   :  { %9 = vsyncpa [#allocation3], 0  ;;  %s3567_s0 = inlined_call_operand.hbm [shape: f32[8,64,64], index: 0, kind: input, shape index: {}]   ;;  %s3568_s1 = inlined_call_operand.vmem [shape: f32[64,32], index: 1, kind: input, shape index: {}]   ;;  %s3569_s2 = inlined_call_operand.hbm [shape: f32[8,32,128], index: 2, kind: input, shape index: {}]   ;;  %s3570_s3 = inlined_call_operand.vmem [shape: f32[1,128], index: 3, kind: input, shape index: {}]   ;;  %s3571_s4 = inlined_call_operand.hbm [shape: f32[64,128], index: 4, kind: output, shape index: {}]  }
   0x1   :  { %10 = vsyncpa [#allocation6], 0 }
   0x2   :  { %11 = vsyncpa [#allocation4], 0  ;;  %s3257_s15 = smov [#allocation2]   ;;  %s3185_s19 = scalar_lea.hbm %s3567_s0, 8192 }
   0x3   :  { %s17_s16 = sshll.u32 %s3257_s15, 4  ;;  %p3186_p0 = scmp.ne.s32.totalorder %s3567_s0, %s3185_s19  ;;  %s18_s16 = int_to_ptr.vmem [resolvable:$true] %s17_s16 }
   0x4   :  { %p3189_p1 = scmp.lt.u32.totalorder %s3185_s19, %s3567_s0 }
   0x6   :  { %p3191_p2 = pnand %p3189_p1, %p3186_p0 }
   0x8   :  { %3194 = shalt.err (!%p3191_p2)
}
   0x9   :  { %s3195_s24 = scalar_lea.vmem %s18_s16, 8192  ;;  %p3200_p4 = scmp.lt.s32.totalorder %s18_s16, %s18_s16 }
   0xa   :  { %p3196_p3 = scmp.ne.s32.totalorder %s18_s16, %s3195_s24  ;;  %p3201_p5 = scmp.lt.s32.totalorder %s3195_s24, %s3195_s24 }
   0xc   :  { %p3202_p6 = por %p3201_p5, %p3200_p4 }
   0xe   :  { %p3203_p7 = pnand %p3202_p6, %p3196_p3 }
  0x10   :  { %3206 = shalt.err (!%p3203_p7)
}
  0x11   :  { %s3258_s25 = smov 128   ;;  %s3259_s26 = smov 8  }
  0x12   :  { %23 = dma.hbm_to_vmem [thread:$0]  %s3567_s0, 8192, %s18_s16, [#allocation3], %s3258_s25, %s3258_s25, %s3259_s26  }
  0x13   :  { %s3260_s29 = smov [#allocation5]   ;;  %s3207_s7 = scalar_lea.hbm %s3569_s2, 4096 }
  0x14   :  { %s31_s30 = sshll.u32 %s3260_s29, 4  ;;  %p3208_p8 = scmp.ne.s32.totalorder %s3569_s2, %s3207_s7  ;;  %s32_s30 = int_to_ptr.vmem [resolvable:$true] %s31_s30 }
  0x15   :  { %p3211_p9 = scmp.lt.u32.totalorder %s3207_s7, %s3569_s2 }
  0x17   :  { %p3213_p10 = pnand %p3211_p9, %p3208_p8 }
  0x19   :  { %3216 = shalt.err (!%p3213_p10)
}
  0x1a   :  { %s3217_s12 = scalar_lea.vmem %s32_s30, 4096  ;;  %p3222_p12 = scmp.lt.s32.totalorder %s32_s30, %s32_s30 }
  0x1b   :  { %p3218_p11 = scmp.ne.s32.totalorder %s32_s30, %s3217_s12  ;;  %p3223_p13 = scmp.lt.s32.totalorder %s3217_s12, %s3217_s12 }
  0x1d   :  { %p3224_p0 = por %p3223_p13, %p3222_p12 }
  0x1f   :  { %p3225_p1 = pnand %p3224_p0, %p3218_p11 }
  0x21   :  { %3228 = shalt.err (!%p3225_p1)
}
  0x22   :  { %37 = dma.hbm_to_vmem [thread:$0]  %s3569_s2, 4096, %s32_s30, [#allocation6], %s3258_s25, %s3258_s25, %s3259_s26  }
  0x23   :  { %3251 = dma.done.wait [#allocation3], 8192  }
  0x24   :  { %3252 = vsyncadd [#allocation3], 4294959104 }
  0x25   :  { %3253 = dma.done.wait [#allocation6], 4096  }
  0x26   :  { %3254 = vsyncadd [#allocation6], 4294963200  ;;  %vm85_vm0 = vcmask 261120   ;;  %v81_v0 = vld [vmem:[#allocation5] sm:$0xff]  ;;  %v82_v1 = vld [vmem:[#allocation5 + $0x8] sm:$0xff]  ;;  %vm223_vm1 = vcmask 523264  }
  0x27   :  { %v83_v2 = vld [vmem:[#allocation5 + $0x10] sm:$0xff]  ;;  %v2916_v3 = vpack.c.bf16 %v82_v1, %v81_v0  ;;  %v84_v4 = vld [vmem:[#allocation5 + $0x18] sm:$0xff]  ;;  %v3320_v5 = vld [vmem:[%s3568_s1] sm:$0xff] }
  0x28   :  { %v2920_v6 = vpack.c.bf16 %v84_v4, %v83_v2  ;;  %2540 = vmatprep.mubr.msk.f32.mxu0 %vm85_vm0, %v3320_v5  ;;  %v362_v7 = vld [vmem:[#allocation5 + $0x20] sm:$0xff]  ;;  %v363_v8 = vld [vmem:[#allocation5 + $0x28] sm:$0xff]  ;;  %v364_v10 = vld [vmem:[#allocation5 + $0x30] sm:$0xff] }
  0x29   :  { %2917 = vmatprep.subr.bf16.mxu0 %v2916_v3  ;;  %v2940_v9 = vpack.c.bf16 %v363_v8, %v362_v7  ;;  %v365_v11 = vld [vmem:[#allocation5 + $0x38] sm:$0xff]  ;;  %v3327_v12 = vld [vmem:[%s3568_s1 + $0x8] sm:$0xff]  ;;  %v3332_v13 = vld [vmem:[%s3568_s1 + $0x10] sm:$0xff] }
  0x2a   :  { %2919 = vmatpush3.bf16.msra.mxu0 %v2916_v3  ;;  %v2944_v14 = vpack.c.bf16 %v365_v11, %v364_v10  ;;  %v618_v15 = vld [vmem:[#allocation5 + $0x40] sm:$0xff]  ;;  %v619_v16 = vld [vmem:[#allocation5 + $0x48] sm:$0xff]  ;;  %v3341_v17 = vld [vmem:[%s3568_s1 + $0x18] sm:$0xff] }
  0x2b   :  { %2921 = vmatprep.subr.bf16.mxu0 %v2920_v6  ;;  %v3346_v18 = vld [vmem:[%s3568_s1 + $0x20] sm:$0xff]  ;;  %v2964_v19 = vpack.c.bf16 %v619_v16, %v618_v15  ;;  %v3355_v20 = vld [vmem:[%s3568_s1 + $0x28] sm:$0xff]  ;;  %v3360_v21 = vld [vmem:[%s3568_s1 + $0x30] sm:$0xff] }
  0x2c   :  { %v3369_v22 = vld [vmem:[%s3568_s1 + $0x38] sm:$0xff]  ;;  %v620_v23 = vld [vmem:[#allocation5 + $0x50] sm:$0xff]  ;;  %v874_v26 = vld [vmem:[#allocation5 + $0x60] sm:$0xff] }
  0x2d   :  { %v621_v24 = vld [vmem:[#allocation5 + $0x58] sm:$0xff]  ;;  %v875_v27 = vld [vmem:[#allocation5 + $0x68] sm:$0xff]  ;;  %v876_v29 = vld [vmem:[#allocation5 + $0x70] sm:$0xff] }
  0x2e   :  { %2923 = vmatpush3.bf16.msra.mxu0 %v2920_v6  ;;  %v2968_v25 = vpack.c.bf16 %v621_v24, %v620_v23  ;;  %v2988_v28 = vpack.c.bf16 %v875_v27, %v874_v26  ;;  %v877_v30 = vld [vmem:[#allocation5 + $0x78] sm:$0xff]  ;;  %v1130_v32 = vld [vmem:[#allocation5 + $0x80] sm:$0xff]  ;;  %v1131_v33 = vld [vmem:[#allocation5 + $0x88] sm:$0xff] }
  0x2f   :  { %2941 = vmatprep.subr.bf16.mxu0 %v2940_v9  ;;  %v2992_v31 = vpack.c.bf16 %v877_v30, %v876_v29  ;;  %v3012_v34 = vpack.c.bf16 %v1131_v33, %v1130_v32  ;;  %v1132_v35 = vld [vmem:[#allocation5 + $0x90] sm:$0xff]  ;;  %v1133_v36 = vld [vmem:[#allocation5 + $0x98] sm:$0xff]  ;;  %v1386_v38 = vld [vmem:[#allocation5 + $0xa0] sm:$0xff] }
  0x30   :  { %v3016_v37 = vpack.c.bf16 %v1133_v36, %v1132_v35  ;;  %v1387_v39 = vld [vmem:[#allocation5 + $0xa8] sm:$0xff]  ;;  %v1388_v41 = vld [vmem:[#allocation5 + $0xb0] sm:$0xff]  ;;  %v1389_v42 = vld [vmem:[#allocation5 + $0xb8] sm:$0xff] }
  0x31   :  { %2541 = vmatmul.mubr.msk.f32.vlgmr.msra.gmra.mrb[0].mxu0 %vm85_vm0, %v3327_v12  ;;  %v3036_v40 = vpack.c.bf16 %v1387_v39, %v1386_v38  ;;  %v3040_v43 = vpack.c.bf16 %v1389_v42, %v1388_v41  ;;  %v1642_v44 = vld [vmem:[#allocation5 + $0xc0] sm:$0xff]  ;;  %v1643_v45 = vld [vmem:[#allocation5 + $0xc8] sm:$0xff]  ;;  %v1644_v47 = vld [vmem:[#allocation5 + $0xd0] sm:$0xff] }
  0x32   :  { %2943 = vmatpush3.bf16.msra.mxu0 %v2940_v9  ;;  %2543 = vmatprep.mubr.msk.f32.mxu0 %vm85_vm0, %v3332_v13  ;;  %v3060_v46 = vpack.c.bf16 %v1643_v45, %v1642_v44  ;;  %v1645_v48 = vld [vmem:[#allocation5 + $0xd8] sm:$0xff]  ;;  %v1898_v50 = vld [vmem:[#allocation5 + $0xe0] sm:$0xff]  ;;  %v1899_v51 = vld [vmem:[#allocation5 + $0xe8] sm:$0xff] }
  0x33   :  { %2945 = vmatprep.subr.bf16.mxu0 %v2944_v14  ;;  %v3064_v49 = vpack.c.bf16 %v1645_v48, %v1644_v47  ;;  %v3084_v52 = vpack.c.bf16 %v1899_v51, %v1898_v50  ;;  %v1900_v53 = vld [vmem:[#allocation5 + $0xf0] sm:$0xff]  ;;  %v1901_v54 = vld [vmem:[#allocation5 + $0xf8] sm:$0xff]  ;;  %v215_v56 = vld [vmem:[#allocation2] sm:$0xff] }
  0x34   :  { %v3088_v55 = vpack.c.bf16 %v1901_v54, %v1900_v53  ;;  %2568 = vmatprep.mubr.msk.f32.mxu1 %vm223_vm1, %v215_v56  ;;  %v2008_v60 = vld [vmem:[#allocation2 + $0x1c0] sm:$0xff]  ;;  %v216_v8 = vld [vmem:[#allocation2 + $0x8] sm:$0xff]  ;;  %v217_v10 = vld [vmem:[#allocation2 + $0x10] sm:$0xff] }
  0x35   :  { %2544 = vmatmul.mubr.msk.f32.gmra.mrb[2].mxu0 %vm85_vm0, %v3341_v17  ;;  %v219_v15 = vld [vmem:[#allocation2 + $0x20] sm:$0xff]  ;;  %v222_v23 = vld [vmem:[#allocation2 + $0x38] sm:$0xff]  ;;  %v474_v30 = vld [vmem:[#allocation2 + $0x50] sm:$0xff] }
  0x36   :  { %2546 = vmatprep.mubr.msk.f32.mxu0 %vm85_vm0, %v3346_v18  ;;  %2947 = vmatpush3.bf16.msra.mxu0 %v2944_v14  ;;  %v475_v33 = vld [vmem:[#allocation2 + $0x58] sm:$0xff]  ;;  %v476_v35 = vld [vmem:[#allocation2 + $0x60] sm:$0xff]  ;;  %v477_v38 = vld [vmem:[#allocation2 + $0x68] sm:$0xff] }
  0x37   :  { %2965 = vmatprep.subr.bf16.mxu0 %v2964_v19  ;;  %v728_v45 = vld [vmem:[#allocation2 + $0x80] sm:$0xff]  ;;  %v729_v48 = vld [vmem:[#allocation2 + $0x88] sm:$0xff]  ;;  %v730_v50 = vld [vmem:[#allocation2 + $0x90] sm:$0xff] }
  0x38   :  { %v731_v53 = vld [vmem:[#allocation2 + $0x98] sm:$0xff] }
  0x39   :  { %2547 = vmatmul.mubr.msk.f32.gmra.mrb[4].mxu0 %vm85_vm0, %v3355_v20 }
  0x3a   :  { %2549 = vmatprep.mubr.msk.f32.mxu0 %vm85_vm0, %v3360_v21 }
  0x3d   :  { %2550 = vmatmul.mubr.msk.f32.gmra.mrb[6].mxu0 %vm85_vm0, %v3369_v22 }
  0x3e   :  { %2588 = vmatprep.mubr.msk.f32.mxu0 %vm85_vm0, %v3320_v5 }
  0x41   :  { %2589 = vmatmul.mubr.msk.f32.vlgmr.msra.gmra.mrb[8].mxu0 %vm85_vm0, %v3327_v12 }
  0x42   :  { %2967 = vmatpush3.bf16.msra.mxu0 %v2964_v19  ;;  %2591 = vmatprep.mubr.msk.f32.mxu0 %vm85_vm0, %v3332_v13 }
  0x43   :  { %2969 = vmatprep.subr.bf16.mxu0 %v2968_v25 }
  0x45   :  { %2592 = vmatmul.mubr.msk.f32.gmra.mrb[10].mxu0 %vm85_vm0, %v3341_v17 }
  0x46   :  { %2594 = vmatprep.mubr.msk.f32.mxu0 %vm85_vm0, %v3346_v18  ;;  %2971 = vmatpush3.bf16.msra.mxu0 %v2968_v25  ;;  %v472_v25 = vld [vmem:[#allocation2 + $0x40] sm:$0xff] }
  0x47   :  { %2989 = vmatprep.subr.bf16.mxu0 %v2988_v28 }
  0x49   :  { %2595 = vmatmul.mubr.msk.f32.gmra.mrb[12].mxu0 %vm85_vm0, %v3355_v20 }
  0x4a   :  { %2597 = vmatprep.mubr.msk.f32.mxu0 %vm85_vm0, %v3360_v21 }
  0x4d   :  { %2598 = vmatmul.mubr.msk.f32.gmra.mrb[14].mxu0 %vm85_vm0, %v3369_v22 }
  0x4e   :  { %2636 = vmatprep.mubr.msk.f32.mxu0 %vm85_vm0, %v3320_v5 }
  0x51   :  { %2637 = vmatmul.mubr.msk.f32.vlgmr.msra.gmra.mrb[16].mxu0 %vm85_vm0, %v3327_v12 }
  0x52   :  { %2991 = vmatpush3.bf16.msra.mxu0 %v2988_v28  ;;  %2639 = vmatprep.mubr.msk.f32.mxu0 %vm85_vm0, %v3332_v13  ;;  %v473_v28 = vld [vmem:[#allocation2 + $0x48] sm:$0xff] }
  0x53   :  { %2993 = vmatprep.subr.bf16.mxu0 %v2992_v31 }
  0x55   :  { %2640 = vmatmul.mubr.msk.f32.gmra.mrb[18].mxu0 %vm85_vm0, %v3341_v17 }
  0x56   :  { %2642 = vmatprep.mubr.msk.f32.mxu0 %vm85_vm0, %v3346_v18  ;;  %2995 = vmatpush3.bf16.msra.mxu0 %v2992_v31 }
  0x57   :  { %3013 = vmatprep.subr.bf16.mxu0 %v3012_v34 }
  0x59   :  { %2643 = vmatmul.mubr.msk.f32.gmra.mrb[20].mxu0 %vm85_vm0, %v3355_v20 }
  0x5a   :  { %2645 = vmatprep.mubr.msk.f32.mxu0 %vm85_vm0, %v3360_v21 }
  0x5d   :  { %2646 = vmatmul.mubr.msk.f32.gmra.mrb[22].mxu0 %vm85_vm0, %v3369_v22 }
  0x5e   :  { %2684 = vmatprep.mubr.msk.f32.mxu0 %vm85_vm0, %v3320_v5 }
  0x61   :  { %2685 = vmatmul.mubr.msk.f32.vlgmr.msra.gmra.mrb[24].mxu0 %vm85_vm0, %v3327_v12 }
  0x62   :  { %3015 = vmatpush3.bf16.msra.mxu0 %v3012_v34  ;;  %2687 = vmatprep.mubr.msk.f32.mxu0 %vm85_vm0, %v3332_v13 }
  0x63   :  { %3017 = vmatprep.subr.bf16.mxu0 %v3016_v37 }
  0x65   :  { %2688 = vmatmul.mubr.msk.f32.gmra.mrb[26].mxu0 %vm85_vm0, %v3341_v17 }
  0x66   :  { %2690 = vmatprep.mubr.msk.f32.mxu0 %vm85_vm0, %v3346_v18  ;;  %3019 = vmatpush3.bf16.msra.mxu0 %v3016_v37 }
  0x67   :  { %3037 = vmatprep.subr.bf16.mxu0 %v3036_v40 }
  0x69   :  { %2691 = vmatmul.mubr.msk.f32.gmra.mrb[28].mxu0 %vm85_vm0, %v3355_v20 }
  0x6a   :  { %2693 = vmatprep.mubr.msk.f32.mxu0 %vm85_vm0, %v3360_v21 }
  0x6d   :  { %2694 = vmatmul.mubr.msk.f32.gmra.mrb[30].mxu0 %vm85_vm0, %v3369_v22 }
  0x6e   :  { %2732 = vmatprep.mubr.msk.f32.mxu0 %vm85_vm0, %v3320_v5 }
  0x71   :  { %2733 = vmatmul.mubr.msk.f32.vlgmr.msra.gmra.mrb[32].mxu0 %vm85_vm0, %v3327_v12 }
  0x72   :  { %3039 = vmatpush3.bf16.msra.mxu0 %v3036_v40  ;;  %2735 = vmatprep.mubr.msk.f32.mxu0 %vm85_vm0, %v3332_v13  ;;  %v478_v40 = vld [vmem:[#allocation2 + $0x70] sm:$0xff] }
  0x73   :  { %3041 = vmatprep.subr.bf16.mxu0 %v3040_v43 }
  0x75   :  { %2736 = vmatmul.mubr.msk.f32.gmra.mrb[34].mxu0 %vm85_vm0, %v3341_v17 }
  0x76   :  { %2738 = vmatprep.mubr.msk.f32.mxu0 %vm85_vm0, %v3346_v18  ;;  %3043 = vmatpush3.bf16.msra.mxu0 %v3040_v43  ;;  %v479_v43 = vld [vmem:[#allocation2 + $0x78] sm:$0xff] }
  0x77   :  { %3061 = vmatprep.subr.bf16.mxu0 %v3060_v46 }
  0x79   :  { %2739 = vmatmul.mubr.msk.f32.gmra.mrb[36].mxu0 %vm85_vm0, %v3355_v20 }
  0x7a   :  { %2741 = vmatprep.mubr.msk.f32.mxu0 %vm85_vm0, %v3360_v21 }
  0x7d   :  { %2742 = vmatmul.mubr.msk.f32.gmra.mrb[38].mxu0 %vm85_vm0, %v3369_v22 }
  0x7e   :  { %2780 = vmatprep.mubr.msk.f32.mxu0 %vm85_vm0, %v3320_v5 }
  0x81   :  { %2781 = vmatmul.mubr.msk.f32.vlgmr.msra.gmra.mrb[40].mxu0 %vm85_vm0, %v3327_v12 }
  0x82   :  { %3063 = vmatpush3.bf16.msra.mxu0 %v3060_v46  ;;  %2783 = vmatprep.mubr.msk.f32.mxu0 %vm85_vm0, %v3332_v13 }
  0x83   :  { %3065 = vmatprep.subr.bf16.mxu0 %v3064_v49 }
  0x85   :  { %2784 = vmatmul.mubr.msk.f32.gmra.mrb[42].mxu0 %vm85_vm0, %v3341_v17 }
  0x86   :  { %2786 = vmatprep.mubr.msk.f32.mxu0 %vm85_vm0, %v3346_v18  ;;  %3067 = vmatpush3.bf16.msra.mxu0 %v3064_v49 }
  0x87   :  { %3085 = vmatprep.subr.bf16.mxu0 %v3084_v52 }
  0x89   :  { %2787 = vmatmul.mubr.msk.f32.gmra.mrb[44].mxu0 %vm85_vm0, %v3355_v20 }
  0x8a   :  { %2789 = vmatprep.mubr.msk.f32.mxu0 %vm85_vm0, %v3360_v21 }
  0x8d   :  { %2790 = vmatmul.mubr.msk.f32.gmra.mrb[46].mxu0 %vm85_vm0, %v3369_v22 }
  0x8e   :  { %2828 = vmatprep.mubr.msk.f32.mxu0 %vm85_vm0, %v3320_v5 }
  0x91   :  { %2829 = vmatmul.mubr.msk.f32.vlgmr.msra.gmra.mrb[48].mxu0 %vm85_vm0, %v3327_v12 }
  0x92   :  { %3087 = vmatpush3.bf16.msra.mxu0 %v3084_v52  ;;  %2831 = vmatprep.mubr.msk.f32.mxu0 %vm85_vm0, %v3332_v13 }
  0x93   :  { %3089 = vmatprep.subr.bf16.mxu0 %v3088_v55 }
  0x95   :  { %2832 = vmatmul.mubr.msk.f32.gmra.mrb[50].mxu0 %vm85_vm0, %v3341_v17 }
  0x96   :  { %2834 = vmatprep.mubr.msk.f32.mxu0 %vm85_vm0, %v3346_v18  ;;  %3091 = vmatpush3.bf16.msra.mxu0 %v3088_v55  ;;  %v732_v55 = vld [vmem:[#allocation2 + $0xa0] sm:$0xff] }
  0x99   :  { %2835 = vmatmul.mubr.msk.f32.gmra.mrb[52].mxu0 %vm85_vm0, %v3355_v20 }
  0x9a   :  { %2837 = vmatprep.mubr.msk.f32.mxu0 %vm85_vm0, %v3360_v21 }
  0x9d   :  { %2838 = vmatmul.mubr.msk.f32.gmra.mrb[54].mxu0 %vm85_vm0, %v3369_v22 }
  0x9e   :  { %2876 = vmatprep.mubr.msk.f32.mxu0 %vm85_vm0, %v3320_v5 }
  0xa1   :  { %2877 = vmatmul.mubr.msk.f32.vlgmr.msra.gmra.mrb[56].mxu0 %vm85_vm0, %v3327_v12 }
  0xa2   :  { %2879 = vmatprep.mubr.msk.f32.mxu0 %vm85_vm0, %v3332_v13  ;;  %v218_v13 = vld [vmem:[#allocation2 + $0x18] sm:$0xff] }
  0xa5   :  { %2880 = vmatmul.mubr.msk.f32.gmra.mrb[58].mxu0 %vm85_vm0, %v3341_v17 }
  0xa6   :  { %2882 = vmatprep.mubr.msk.f32.mxu0 %vm85_vm0, %v3346_v18  ;;  %v220_v18 = vld [vmem:[#allocation2 + $0x28] sm:$0xff] }
  0xa9   :  { %2883 = vmatmul.mubr.msk.f32.gmra.mrb[60].mxu0 %vm85_vm0, %v3355_v20  ;;  %v221_v20 = vld [vmem:[#allocation2 + $0x30] sm:$0xff] }
  0xaa   :  { %2885 = vmatprep.mubr.msk.f32.mxu0 %vm85_vm0, %v3360_v21 }
  0xad   :  { %2886 = vmatmul.mubr.msk.f32.gmra.mrb[62].mxu0 %vm85_vm0, %v3369_v22 }
  0xae   :  { %2904 = vmatprep.mubr.msk.f32.mxu0 %vm223_vm1, %v2008_v60  ;;  %v734_v60 = vld [vmem:[#allocation2 + $0xb0] sm:$0xff] }
 0x104   :  { %v2542_v57 = vpop.f32.mrb[0].mxu0 }
 0x105   :  { %v176_v58 = vpop.f32.mrb[1].mxu0 }
 0x106   :  { %v2924_v59 = vpack.c.bf16 %v2542_v57, %v176_v58  ;;  %v733_v58 = vld [vmem:[#allocation2 + $0xa8] sm:$0xff] }
 0x108   :  { %v2545_v61 = vpop.f32.mrb[2].mxu0  ;;  %2925 = vmatprep.subr.bf16.mxu1 %v2924_v59 }
 0x109   :  { %v186_v62 = vpop.f32.mrb[3].mxu0  ;;  %2927 = vmatpush3.bf16.msra.mxu1 %v2924_v59 }
 0x10a   :  { %v2928_v63 = vpack.c.bf16 %v2545_v61, %v186_v62 }
 0x10c   :  { %v2548_v0 = vpop.f32.mrb[4].mxu0  ;;  %2929 = vmatprep.subr.bf16.mxu1 %v2928_v63 }
 0x10d   :  { %v196_v1 = vpop.f32.mrb[5].mxu0  ;;  %2931 = vmatpush3.bf16.msra.mxu1 %v2928_v63  ;;  %v735_v63 = vld [vmem:[#allocation2 + $0xb8] sm:$0xff] }
 0x10e   :  { %v2932_v2 = vpack.c.bf16 %v2548_v0, %v196_v1  ;;  %v984_v1 = vld [vmem:[#allocation2 + $0xc0] sm:$0xff] }
 0x110   :  { %v2551_v3 = vpop.f32.mrb[6].mxu0  ;;  %2933 = vmatprep.subr.bf16.mxu1 %v2932_v2 }
 0x111   :  { %v206_v4 = vpop.f32.mrb[7].mxu0  ;;  %2935 = vmatpush3.bf16.msra.mxu1 %v2932_v2 }
 0x112   :  { %v2936_v5 = vpack.c.bf16 %v2551_v3, %v206_v4  ;;  %v985_v4 = vld [vmem:[#allocation2 + $0xc8] sm:$0xff] }
 0x114   :  { %2937 = vmatprep.subr.bf16.mxu1 %v2936_v5  ;;  %v2590_v6 = vpop.f32.mrb[8].mxu0 }
 0x115   :  { %2939 = vmatpush3.bf16.msra.mxu1 %v2936_v5  ;;  %v432_v7 = vpop.f32.mrb[9].mxu0 }
 0x116   :  { %v2948_v9 = vpack.c.bf16 %v2590_v6, %v432_v7  ;;  %v986_v6 = vld [vmem:[#allocation2 + $0xd0] sm:$0xff] }
 0x118   :  { %2569 = vmatmul.mubr.msk.f32.vlgmr.msra.gmra.mrb[0].mxu1 %vm223_vm1, %v216_v8  ;;  %v2593_v11 = vpop.f32.mrb[10].mxu0  ;;  %2949 = vmatprep.subr.bf16.mxu1 %v2948_v9 }
 0x119   :  { %v442_v12 = vpop.f32.mrb[11].mxu0  ;;  %2951 = vmatpush3.bf16.msra.mxu1 %v2948_v9  ;;  %2571 = vmatprep.mubr.msk.f32.mxu1 %vm223_vm1, %v217_v10  ;;  %v987_v9 = vld [vmem:[#allocation2 + $0xd8] sm:$0xff] }
 0x11a   :  { %v2952_v14 = vpack.c.bf16 %v2593_v11, %v442_v12  ;;  %v988_v11 = vld [vmem:[#allocation2 + $0xe0] sm:$0xff] }
 0x11c   :  { %2572 = vmatmul.mubr.msk.f32.gmra.mrb[2].mxu1 %vm223_vm1, %v218_v13  ;;  %v2596_v16 = vpop.f32.mrb[12].mxu0  ;;  %2953 = vmatprep.subr.bf16.mxu1 %v2952_v14 }
 0x11d   :  { %v452_v17 = vpop.f32.mrb[13].mxu0  ;;  %2955 = vmatpush3.bf16.msra.mxu1 %v2952_v14  ;;  %2574 = vmatprep.mubr.msk.f32.mxu1 %vm223_vm1, %v219_v15  ;;  %v989_v14 = vld [vmem:[#allocation2 + $0xe8] sm:$0xff] }
 0x11e   :  { %v2956_v19 = vpack.c.bf16 %v2596_v16, %v452_v17  ;;  %v990_v16 = vld [vmem:[#allocation2 + $0xf0] sm:$0xff] }
 0x120   :  { %2575 = vmatmul.mubr.msk.f32.gmra.mrb[4].mxu1 %vm223_vm1, %v220_v18  ;;  %v2599_v21 = vpop.f32.mrb[14].mxu0  ;;  %2957 = vmatprep.subr.bf16.mxu1 %v2956_v19 }
 0x121   :  { %v462_v22 = vpop.f32.mrb[15].mxu0  ;;  %2959 = vmatpush3.bf16.msra.mxu1 %v2956_v19  ;;  %2577 = vmatprep.mubr.msk.f32.mxu1 %vm223_vm1, %v221_v20  ;;  %v991_v19 = vld [vmem:[#allocation2 + $0xf8] sm:$0xff] }
 0x122   :  { %v2960_v24 = vpack.c.bf16 %v2599_v21, %v462_v22  ;;  %v1240_v21 = vld [vmem:[#allocation2 + $0x100] sm:$0xff] }
 0x124   :  { %2578 = vmatmul.mubr.msk.f32.gmra.mrb[6].mxu1 %vm223_vm1, %v222_v23  ;;  %2961 = vmatprep.subr.bf16.mxu1 %v2960_v24  ;;  %v2638_v26 = vpop.f32.mrb[16].mxu0 }
 0x125   :  { %2963 = vmatpush3.bf16.msra.mxu1 %v2960_v24  ;;  %v688_v27 = vpop.f32.mrb[17].mxu0  ;;  %2616 = vmatprep.mubr.msk.f32.mxu1 %vm223_vm1, %v472_v25  ;;  %v1241_v24 = vld [vmem:[#allocation2 + $0x108] sm:$0xff] }
 0x126   :  { %v2972_v29 = vpack.c.bf16 %v2638_v26, %v688_v27  ;;  %v1242_v26 = vld [vmem:[#allocation2 + $0x110] sm:$0xff] }
 0x128   :  { %2617 = vmatmul.mubr.msk.f32.vlgmr.msra.gmra.mrb[0].mxu1 %vm223_vm1, %v473_v28  ;;  %v2641_v31 = vpop.f32.mrb[18].mxu0  ;;  %2973 = vmatprep.subr.bf16.mxu1 %v2972_v29 }
 0x129   :  { %v698_v32 = vpop.f32.mrb[19].mxu0  ;;  %2975 = vmatpush3.bf16.msra.mxu1 %v2972_v29  ;;  %2619 = vmatprep.mubr.msk.f32.mxu1 %vm223_vm1, %v474_v30  ;;  %v1243_v29 = vld [vmem:[#allocation2 + $0x118] sm:$0xff] }
 0x12a   :  { %v2976_v34 = vpack.c.bf16 %v2641_v31, %v698_v32  ;;  %v1244_v31 = vld [vmem:[#allocation2 + $0x120] sm:$0xff] }
 0x12c   :  { %2620 = vmatmul.mubr.msk.f32.gmra.mrb[2].mxu1 %vm223_vm1, %v475_v33  ;;  %v2644_v36 = vpop.f32.mrb[20].mxu0  ;;  %2977 = vmatprep.subr.bf16.mxu1 %v2976_v34 }
 0x12d   :  { %v708_v37 = vpop.f32.mrb[21].mxu0  ;;  %2979 = vmatpush3.bf16.msra.mxu1 %v2976_v34  ;;  %2622 = vmatprep.mubr.msk.f32.mxu1 %vm223_vm1, %v476_v35  ;;  %v1245_v34 = vld [vmem:[#allocation2 + $0x128] sm:$0xff] }
 0x12e   :  { %v2980_v39 = vpack.c.bf16 %v2644_v36, %v708_v37  ;;  %v1246_v36 = vld [vmem:[#allocation2 + $0x130] sm:$0xff] }
 0x130   :  { %2623 = vmatmul.mubr.msk.f32.gmra.mrb[4].mxu1 %vm223_vm1, %v477_v38  ;;  %v2647_v41 = vpop.f32.mrb[22].mxu0  ;;  %2981 = vmatprep.subr.bf16.mxu1 %v2980_v39 }
 0x131   :  { %v718_v42 = vpop.f32.mrb[23].mxu0  ;;  %2983 = vmatpush3.bf16.msra.mxu1 %v2980_v39  ;;  %2625 = vmatprep.mubr.msk.f32.mxu1 %vm223_vm1, %v478_v40  ;;  %v1247_v39 = vld [vmem:[#allocation2 + $0x138] sm:$0xff] }
 0x132   :  { %v2984_v44 = vpack.c.bf16 %v2647_v41, %v718_v42  ;;  %v1496_v41 = vld [vmem:[#allocation2 + $0x140] sm:$0xff] }
 0x134   :  { %2626 = vmatmul.mubr.msk.f32.gmra.mrb[6].mxu1 %vm223_vm1, %v479_v43  ;;  %2985 = vmatprep.subr.bf16.mxu1 %v2984_v44  ;;  %v2686_v46 = vpop.f32.mrb[24].mxu0 }
 0x135   :  { %2987 = vmatpush3.bf16.msra.mxu1 %v2984_v44  ;;  %v944_v47 = vpop.f32.mrb[25].mxu0  ;;  %2664 = vmatprep.mubr.msk.f32.mxu1 %vm223_vm1, %v728_v45  ;;  %v1497_v44 = vld [vmem:[#allocation2 + $0x148] sm:$0xff] }
 0x136   :  { %v2996_v49 = vpack.c.bf16 %v2686_v46, %v944_v47  ;;  %v1498_v46 = vld [vmem:[#allocation2 + $0x150] sm:$0xff] }
 0x138   :  { %2665 = vmatmul.mubr.msk.f32.vlgmr.msra.gmra.mrb[0].mxu1 %vm223_vm1, %v729_v48  ;;  %v2689_v51 = vpop.f32.mrb[26].mxu0  ;;  %2997 = vmatprep.subr.bf16.mxu1 %v2996_v49 }
 0x139   :  { %v954_v52 = vpop.f32.mrb[27].mxu0  ;;  %2999 = vmatpush3.bf16.msra.mxu1 %v2996_v49  ;;  %2667 = vmatprep.mubr.msk.f32.mxu1 %vm223_vm1, %v730_v50  ;;  %v1499_v49 = vld [vmem:[#allocation2 + $0x158] sm:$0xff] }
 0x13a   :  { %v3000_v54 = vpack.c.bf16 %v2689_v51, %v954_v52  ;;  %v1500_v51 = vld [vmem:[#allocation2 + $0x160] sm:$0xff] }
 0x13c   :  { %2668 = vmatmul.mubr.msk.f32.gmra.mrb[2].mxu1 %vm223_vm1, %v731_v53  ;;  %v2692_v56 = vpop.f32.mrb[28].mxu0  ;;  %3001 = vmatprep.subr.bf16.mxu1 %v3000_v54 }
 0x13d   :  { %v964_v57 = vpop.f32.mrb[29].mxu0  ;;  %3003 = vmatpush3.bf16.msra.mxu1 %v3000_v54  ;;  %2670 = vmatprep.mubr.msk.f32.mxu1 %vm223_vm1, %v732_v55  ;;  %v1501_v54 = vld [vmem:[#allocation2 + $0x168] sm:$0xff] }
 0x13e   :  { %v3004_v59 = vpack.c.bf16 %v2692_v56, %v964_v57  ;;  %v1502_v56 = vld [vmem:[#allocation2 + $0x170] sm:$0xff] }
 0x140   :  { %2671 = vmatmul.mubr.msk.f32.gmra.mrb[4].mxu1 %vm223_vm1, %v733_v58  ;;  %v2695_v61 = vpop.f32.mrb[30].mxu0  ;;  %3005 = vmatprep.subr.bf16.mxu1 %v3004_v59 }
 0x141   :  { %v974_v62 = vpop.f32.mrb[31].mxu0  ;;  %3007 = vmatpush3.bf16.msra.mxu1 %v3004_v59  ;;  %2673 = vmatprep.mubr.msk.f32.mxu1 %vm223_vm1, %v734_v60  ;;  %v1503_v59 = vld [vmem:[#allocation2 + $0x178] sm:$0xff] }
 0x142   :  { %v3008_v0 = vpack.c.bf16 %v2695_v61, %v974_v62  ;;  %v1752_v61 = vld [vmem:[#allocation2 + $0x180] sm:$0xff] }
 0x144   :  { %2674 = vmatmul.mubr.msk.f32.gmra.mrb[6].mxu1 %vm223_vm1, %v735_v63  ;;  %3009 = vmatprep.subr.bf16.mxu1 %v3008_v0  ;;  %v2734_v2 = vpop.f32.mrb[32].mxu0 }
 0x145   :  { %3011 = vmatpush3.bf16.msra.mxu1 %v3008_v0  ;;  %v1200_v3 = vpop.f32.mrb[33].mxu0  ;;  %2712 = vmatprep.mubr.msk.f32.mxu1 %vm223_vm1, %v984_v1  ;;  %v1753_v0 = vld [vmem:[#allocation2 + $0x188] sm:$0xff] }
 0x146   :  { %v3020_v5 = vpack.c.bf16 %v2734_v2, %v1200_v3  ;;  %v1754_v2 = vld [vmem:[#allocation2 + $0x190] sm:$0xff] }
 0x148   :  { %2713 = vmatmul.mubr.msk.f32.vlgmr.msra.gmra.mrb[0].mxu1 %vm223_vm1, %v985_v4  ;;  %v2737_v7 = vpop.f32.mrb[34].mxu0  ;;  %3021 = vmatprep.subr.bf16.mxu1 %v3020_v5 }
 0x149   :  { %v1210_v8 = vpop.f32.mrb[35].mxu0  ;;  %3023 = vmatpush3.bf16.msra.mxu1 %v3020_v5  ;;  %2715 = vmatprep.mubr.msk.f32.mxu1 %vm223_vm1, %v986_v6  ;;  %v1755_v5 = vld [vmem:[#allocation2 + $0x198] sm:$0xff] }
 0x14a   :  { %v3024_v10 = vpack.c.bf16 %v2737_v7, %v1210_v8  ;;  %v1756_v7 = vld [vmem:[#allocation2 + $0x1a0] sm:$0xff] }
 0x14c   :  { %2716 = vmatmul.mubr.msk.f32.gmra.mrb[2].mxu1 %vm223_vm1, %v987_v9  ;;  %v2740_v12 = vpop.f32.mrb[36].mxu0  ;;  %3025 = vmatprep.subr.bf16.mxu1 %v3024_v10 }
 0x14d   :  { %v1220_v13 = vpop.f32.mrb[37].mxu0  ;;  %3027 = vmatpush3.bf16.msra.mxu1 %v3024_v10  ;;  %2718 = vmatprep.mubr.msk.f32.mxu1 %vm223_vm1, %v988_v11  ;;  %v1757_v10 = vld [vmem:[#allocation2 + $0x1a8] sm:$0xff] }
 0x14e   :  { %v3028_v15 = vpack.c.bf16 %v2740_v12, %v1220_v13  ;;  %v1758_v12 = vld [vmem:[#allocation2 + $0x1b0] sm:$0xff] }
 0x150   :  { %2719 = vmatmul.mubr.msk.f32.gmra.mrb[4].mxu1 %vm223_vm1, %v989_v14  ;;  %v2743_v17 = vpop.f32.mrb[38].mxu0  ;;  %3029 = vmatprep.subr.bf16.mxu1 %v3028_v15 }
 0x151   :  { %v1230_v18 = vpop.f32.mrb[39].mxu0  ;;  %3031 = vmatpush3.bf16.msra.mxu1 %v3028_v15  ;;  %2721 = vmatprep.mubr.msk.f32.mxu1 %vm223_vm1, %v990_v16  ;;  %v1759_v15 = vld [vmem:[#allocation2 + $0x1b8] sm:$0xff] }
 0x152   :  { %v3032_v20 = vpack.c.bf16 %v2743_v17, %v1230_v18  ;;  %v2010_v17 = vld [vmem:[#allocation2 + $0x1d0] sm:$0xff]  ;;  %v2009_v18 = vld [vmem:[#allocation2 + $0x1c8] sm:$0xff] }
 0x154   :  { %2722 = vmatmul.mubr.msk.f32.gmra.mrb[6].mxu1 %vm223_vm1, %v991_v19  ;;  %3033 = vmatprep.subr.bf16.mxu1 %v3032_v20  ;;  %v2782_v22 = vpop.f32.mrb[40].mxu0  ;;  %v2011_v19 = vld [vmem:[#allocation2 + $0x1d8] sm:$0xff] }
 0x155   :  { %3035 = vmatpush3.bf16.msra.mxu1 %v3032_v20  ;;  %v1456_v23 = vpop.f32.mrb[41].mxu0  ;;  %2760 = vmatprep.mubr.msk.f32.mxu1 %vm223_vm1, %v1240_v21  ;;  %v2012_v20 = vld [vmem:[#allocation2 + $0x1e0] sm:$0xff]  ;;  %v2013_v21 = vld [vmem:[#allocation2 + $0x1e8] sm:$0xff] }
 0x156   :  { %v3044_v25 = vpack.c.bf16 %v2782_v22, %v1456_v23  ;;  %v2014_v22 = vld [vmem:[#allocation2 + $0x1f0] sm:$0xff]  ;;  %v2015_v23 = vld [vmem:[#allocation2 + $0x1f8] sm:$0xff] }
 0x158   :  { %2761 = vmatmul.mubr.msk.f32.vlgmr.msra.gmra.mrb[0].mxu1 %vm223_vm1, %v1241_v24  ;;  %v2785_v27 = vpop.f32.mrb[42].mxu0  ;;  %3045 = vmatprep.subr.bf16.mxu1 %v3044_v25 }
 0x159   :  { %v1466_v28 = vpop.f32.mrb[43].mxu0  ;;  %3047 = vmatpush3.bf16.msra.mxu1 %v3044_v25  ;;  %2763 = vmatprep.mubr.msk.f32.mxu1 %vm223_vm1, %v1242_v26  ;;  %v2179_v26 = vld [vmem:[%s3570_s3] ss:$0 sm:$0xff]  ;;  %s3261_s3 = smov [#allocation7]  }
 0x15a   :  { %v3048_v30 = vpack.c.bf16 %v2785_v27, %v1466_v28  ;;  %s2166_s6 = sshll.u32 %s3261_s3, 4  ;;  %s2167_s6 = int_to_ptr.vmem [resolvable:$true] %s2166_s6 }
 0x15b   :  { %s3229_s7 = scalar_lea.vmem %s2167_s6, 1024  ;;  %p3234_p3 = scmp.lt.s32.totalorder %s2167_s6, %s2167_s6 }
 0x15c   :  { %2764 = vmatmul.mubr.msk.f32.gmra.mrb[2].mxu1 %vm223_vm1, %v1243_v29  ;;  %v2788_v32 = vpop.f32.mrb[44].mxu0  ;;  %3049 = vmatprep.subr.bf16.mxu1 %v3048_v30  ;;  %p3230_p2 = scmp.ne.s32.totalorder %s2167_s6, %s3229_s7  ;;  %p3235_p4 = scmp.lt.s32.totalorder %s3229_s7, %s3229_s7 }
 0x15d   :  { %v1476_v33 = vpop.f32.mrb[45].mxu0  ;;  %3051 = vmatpush3.bf16.msra.mxu1 %v3048_v30  ;;  %2766 = vmatprep.mubr.msk.f32.mxu1 %vm223_vm1, %v1244_v31 }
 0x15e   :  { %v3052_v35 = vpack.c.bf16 %v2788_v32, %v1476_v33  ;;  %p3236_p5 = por %p3235_p4, %p3234_p3 }
 0x160   :  { %2767 = vmatmul.mubr.msk.f32.gmra.mrb[4].mxu1 %vm223_vm1, %v1245_v34  ;;  %v2791_v37 = vpop.f32.mrb[46].mxu0  ;;  %3053 = vmatprep.subr.bf16.mxu1 %v3052_v35  ;;  %p3237_p6 = pnand %p3236_p5, %p3230_p2 }
 0x161   :  { %v1486_v38 = vpop.f32.mrb[47].mxu0  ;;  %3055 = vmatpush3.bf16.msra.mxu1 %v3052_v35  ;;  %2769 = vmatprep.mubr.msk.f32.mxu1 %vm223_vm1, %v1246_v36 }
 0x162   :  { %v3056_v40 = vpack.c.bf16 %v2791_v37, %v1486_v38 }
 0x164   :  { %2770 = vmatmul.mubr.msk.f32.gmra.mrb[6].mxu1 %vm223_vm1, %v1247_v39  ;;  %3057 = vmatprep.subr.bf16.mxu1 %v3056_v40  ;;  %v2830_v42 = vpop.f32.mrb[48].mxu0 }
 0x165   :  { %3059 = vmatpush3.bf16.msra.mxu1 %v3056_v40  ;;  %v1712_v43 = vpop.f32.mrb[49].mxu0  ;;  %2808 = vmatprep.mubr.msk.f32.mxu1 %vm223_vm1, %v1496_v41 }
 0x166   :  { %v3068_v45 = vpack.c.bf16 %v2830_v42, %v1712_v43 }
 0x168   :  { %2809 = vmatmul.mubr.msk.f32.vlgmr.msra.gmra.mrb[0].mxu1 %vm223_vm1, %v1497_v44  ;;  %v2833_v47 = vpop.f32.mrb[50].mxu0  ;;  %3069 = vmatprep.subr.bf16.mxu1 %v3068_v45 }
 0x169   :  { %v1722_v48 = vpop.f32.mrb[51].mxu0  ;;  %3071 = vmatpush3.bf16.msra.mxu1 %v3068_v45  ;;  %2811 = vmatprep.mubr.msk.f32.mxu1 %vm223_vm1, %v1498_v46 }
 0x16a   :  { %v3072_v50 = vpack.c.bf16 %v2833_v47, %v1722_v48 }
 0x16c   :  { %2812 = vmatmul.mubr.msk.f32.gmra.mrb[2].mxu1 %vm223_vm1, %v1499_v49  ;;  %v2836_v52 = vpop.f32.mrb[52].mxu0  ;;  %3073 = vmatprep.subr.bf16.mxu1 %v3072_v50 }
 0x16d   :  { %v1732_v53 = vpop.f32.mrb[53].mxu0  ;;  %3075 = vmatpush3.bf16.msra.mxu1 %v3072_v50  ;;  %2814 = vmatprep.mubr.msk.f32.mxu1 %vm223_vm1, %v1500_v51 }
 0x16e   :  { %v3076_v55 = vpack.c.bf16 %v2836_v52, %v1732_v53 }
 0x170   :  { %2815 = vmatmul.mubr.msk.f32.gmra.mrb[4].mxu1 %vm223_vm1, %v1501_v54  ;;  %v2839_v57 = vpop.f32.mrb[54].mxu0  ;;  %3077 = vmatprep.subr.bf16.mxu1 %v3076_v55 }
 0x171   :  { %v1742_v58 = vpop.f32.mrb[55].mxu0  ;;  %3079 = vmatpush3.bf16.msra.mxu1 %v3076_v55  ;;  %2817 = vmatprep.mubr.msk.f32.mxu1 %vm223_vm1, %v1502_v56 }
 0x172   :  { %v3080_v60 = vpack.c.bf16 %v2839_v57, %v1742_v58 }
 0x174   :  { %2818 = vmatmul.mubr.msk.f32.gmra.mrb[6].mxu1 %vm223_vm1, %v1503_v59  ;;  %3081 = vmatprep.subr.bf16.mxu1 %v3080_v60  ;;  %v2878_v62 = vpop.f32.mrb[56].mxu0 }
 0x175   :  { %3083 = vmatpush3.bf16.msra.mxu1 %v3080_v60  ;;  %v1968_v63 = vpop.f32.mrb[57].mxu0  ;;  %2856 = vmatprep.mubr.msk.f32.mxu1 %vm223_vm1, %v1752_v61 }
 0x176   :  { %v3092_v1 = vpack.c.bf16 %v2878_v62, %v1968_v63 }
 0x178   :  { %2857 = vmatmul.mubr.msk.f32.vlgmr.msra.gmra.mrb[0].mxu1 %vm223_vm1, %v1753_v0  ;;  %v2881_v3 = vpop.f32.mrb[58].mxu0  ;;  %3093 = vmatprep.subr.bf16.mxu0 %v3092_v1 }
 0x179   :  { %3108 = vmatprep.subr.bf16.mxu1 %v3092_v1  ;;  %v1978_v4 = vpop.f32.mrb[59].mxu0  ;;  %3095 = vmatpush3.bf16.msra.mxu0 %v3092_v1 }
 0x17a   :  { %v3096_v6 = vpack.c.bf16 %v2881_v3, %v1978_v4  ;;  %3112 = vmatpush3.bf16.msra.mxu1 %v3092_v1  ;;  %2859 = vmatprep.mubr.msk.f32.mxu1 %vm223_vm1, %v1754_v2 }
 0x17c   :  { %2860 = vmatmul.mubr.msk.f32.gmra.mrb[2].mxu1 %vm223_vm1, %v1755_v5  ;;  %v2884_v8 = vpop.f32.mrb[60].mxu0  ;;  %3097 = vmatprep.subr.bf16.mxu0 %v3096_v6 }
 0x17d   :  { %3109 = vmatprep.subr.bf16.mxu1 %v3096_v6  ;;  %v1988_v9 = vpop.f32.mrb[61].mxu0  ;;  %3099 = vmatpush3.bf16.msra.mxu0 %v3096_v6 }
 0x17e   :  { %v3100_v11 = vpack.c.bf16 %v2884_v8, %v1988_v9  ;;  %3113 = vmatpush3.bf16.msra.mxu1 %v3096_v6  ;;  %2862 = vmatprep.mubr.msk.f32.mxu1 %vm223_vm1, %v1756_v7 }
 0x180   :  { %2863 = vmatmul.mubr.msk.f32.gmra.mrb[4].mxu1 %vm223_vm1, %v1757_v10  ;;  %v2887_v13 = vpop.f32.mrb[62].mxu0  ;;  %3101 = vmatprep.subr.bf16.mxu0 %v3100_v11 }
 0x181   :  { %3110 = vmatprep.subr.bf16.mxu1 %v3100_v11  ;;  %v1998_v14 = vpop.f32.mrb[63].mxu0  ;;  %3103 = vmatpush3.bf16.msra.mxu0 %v3100_v11 }
 0x182   :  { %v3104_v16 = vpack.c.bf16 %v2887_v13, %v1998_v14  ;;  %3114 = vmatpush3.bf16.msra.mxu1 %v3100_v11  ;;  %2865 = vmatprep.mubr.msk.f32.mxu1 %vm223_vm1, %v1758_v12 }
 0x184   :  { %2866 = vmatmul.mubr.msk.f32.gmra.mrb[6].mxu1 %vm223_vm1, %v1759_v15  ;;  %3105 = vmatprep.subr.bf16.mxu0 %v3104_v16 }
 0x185   :  { %3111 = vmatprep.subr.bf16.mxu1 %v3104_v16  ;;  %3107 = vmatpush3.bf16.msra.mxu0 %v3104_v16 }
 0x186   :  { %3115 = vmatpush3.bf16.msra.mxu1 %v3104_v16  ;;  %2907 = vmatprep.mubr.msk.f32.mxu1 %vm223_vm1, %v2010_v17 }
 0x188   :  { %2905 = vmatmul.mubr.msk.f32.vlgmr.msra.gmra.mrb[64].mxu0 %vm223_vm1, %v2009_v18 }
 0x189   :  { %2908 = vmatmul.mubr.msk.f32.vlgmr.msra.gmra.mrb[2].mxu1 %vm223_vm1, %v2011_v19 }
 0x18a   :  { %2910 = vmatprep.mubr.msk.f32.mxu1 %vm223_vm1, %v2012_v20 }
 0x18d   :  { %2911 = vmatmul.mubr.msk.f32.gmra.mrb[4].mxu1 %vm223_vm1, %v2013_v21 }
 0x18e   :  { %2913 = vmatprep.mubr.msk.f32.mxu1 %vm223_vm1, %v2014_v22 }
 0x191   :  { %2914 = vmatmul.mubr.msk.f32.gmra.mrb[6].mxu1 %vm223_vm1, %v2015_v23 }
 0x24b   :  { %v2858_v24 = vpop.f32.mrb[0].mxu1 }
 0x24c   :  { %v1850_v25 = vpop.f32.mrb[1].mxu1  ;;  %v3116_v27 = vadd.f32 %v2858_v24, %v2179_v26 }
 0x24d   :  { %v3118_v28 = vadd.f32 %v2179_v26, %v1850_v25 }
 0x25b   :  { %v2906_v29 = vpop.f32.mrb[64].mxu0 }
 0x25c   :  { %v3117_v30 = vadd.f32 %v3116_v27, %v2906_v29  ;;  %v2909_v31 = vpop.f32.mrb[2].mxu1  ;;  %v2106_v32 = vpop.f32.mrb[65].mxu0 }
 0x25d   :  { %v3120_v33 = vadd.f32 %v2909_v31, %v2179_v26  ;;  %v3119_v34 = vadd.f32 %v3118_v28, %v2106_v32  ;;  %v2116_v35 = vpop.f32.mrb[3].mxu1 }
 0x25e   :  { %2154 = vst [vmem:[#allocation7 + $0x8] sm:$0xff] %v3117_v30  ;;  %v3121_v36 = vadd.f32 %v2179_v26, %v2116_v35 }
 0x25f   :  { %2156 = vst [vmem:[#allocation7 + $0x18] sm:$0xff] %v3120_v33  ;;  %2153 = vst [vmem:[#allocation7] sm:$0xff] %v3119_v34 }
 0x260   :  { %2155 = vst [vmem:[#allocation7 + $0x10] sm:$0xff] %v3121_v36  ;;  %v2912_v37 = vpop.f32.mrb[4].mxu1 }
 0x261   :  { %v3122_v38 = vadd.f32 %v2912_v37, %v2179_v26  ;;  %v2126_v39 = vpop.f32.mrb[5].mxu1 }
 0x262   :  { %v3123_v40 = vadd.f32 %v2179_v26, %v2126_v39 }
 0x263   :  { %2158 = vst [vmem:[#allocation7 + $0x28] sm:$0xff] %v3122_v38 }
 0x264   :  { %2157 = vst [vmem:[#allocation7 + $0x20] sm:$0xff] %v3123_v40  ;;  %v2915_v41 = vpop.f32.mrb[6].mxu1 }
 0x265   :  { %v3124_v42 = vadd.f32 %v2915_v41, %v2179_v26  ;;  %v2136_v43 = vpop.f32.mrb[7].mxu1 }
 0x266   :  { %v3125_v44 = vadd.f32 %v2179_v26, %v2136_v43 }
 0x267   :  { %2160 = vst [vmem:[#allocation7 + $0x38] sm:$0xff] %v3124_v42 }
 0x268   :  { %2159 = vst [vmem:[#allocation7 + $0x30] sm:$0xff] %v3125_v44 }
 0x269   :  { %3240 = shalt.err (!%p3237_p6)
}
 0x26a   :  { %s3241_s10 = scalar_lea.hbm %s3571_s4, 1024 }
 0x26b   :  { %p3242_p7 = scmp.ne.s32.totalorder %s3571_s4, %s3241_s10  ;;  %p3245_p8 = scmp.lt.u32.totalorder %s3241_s10, %s3571_s4 }
 0x26d   :  { %p3247_p9 = pnand %p3245_p8, %p3242_p7 }
 0x26f   :  { %3250 = shalt.err (!%p3247_p9)
}
 0x270   :  { %2172 = dma.vmem_to_hbm [thread:$0]  %s2167_s6, 1024, %s3571_s4, [#allocation4], %s3258_s25, %s3258_s25, %s3259_s26  }
 0x271   :  { %3255 = dma.done.wait [#allocation4], 1024  }
 0x272   :  { %3256 = vsyncadd [#allocation4], 4294966272 }
 0x273   :  { %2176 = vsyncpa [#allocation3], 1 }
 0x274   :  { %2177 = vsyncpa [#allocation6], 1 }
 0x275   :  { %2178 = vsyncpa [#allocation4], 1 }

</bundles_post_ra>
